<compile_context>
chip_gen: v7x
topology: tpu7x:2x2x1
jax: 0.10.0
libtpu: 0.0.40
codegen_flags: <defaults>
</compile_context>

<pallas_src>
import functools

import jax
import jax.numpy as jnp
from jax.experimental import pallas as pl
from jax.experimental.pallas import tpu as pltpu

LANE = 128


def _round_up(x, m):
    return ((x + m - 1) // m) * m


def _decoder_kernel(na_ref, ne_ref, w1a_ref, w1b_ref, b1_ref, w2_ref, b2_ref,
                    w3_ref, b3_ref, out_ref, *, out_size):
    cdt = w1a_ref.dtype                       # compute dtype (bf16)

    # Layer 1: cat(node_attr, node_embedding) @ W1 + b1, SiLU.
    # Concat is expressed as two K=H matmuls against the pre-split W1 halves
    # (no (bm, 2H) copy; f32 accumulation on the MXU).
    na = na_ref[...].astype(cdt)
    ne = ne_ref[...].astype(cdt)
    h = (jnp.dot(na, w1a_ref[...], preferred_element_type=jnp.float32)
         + jnp.dot(ne, w1b_ref[...], preferred_element_type=jnp.float32)
         + b1_ref[...])
    h = h * jax.nn.sigmoid(h)                 # SiLU in f32 (EUP)

    # Layer 2: Linear(H -> H), SiLU.
    h2 = (jnp.dot(h.astype(cdt), w2_ref[...],
                  preferred_element_type=jnp.float32) + b2_ref[...])
    h2 = h2 * jax.nn.sigmoid(h2)

    # Layer 3: Linear(H -> OUT). Compute 128-wide (zero-padded W3) in VMEM,
    # store only the real OUT columns -> tiny HBM writeback.
    out = (jnp.dot(h2.astype(cdt), w3_ref[...],
                   preferred_element_type=jnp.float32) + b3_ref[...])
    out_ref[...] = out[:, :out_size].astype(out_ref.dtype)


def prepare_decoder_params(params, compute_dtype=jnp.bfloat16):
    """One-time weight formatting (do this once per model, not per call)."""
    w1, b1, w2, b2, w3, b3 = params
    in2, h = w1.shape
    assert in2 == 2 * h
    out_size = w3.shape[1]
    out_p = _round_up(max(out_size, LANE), LANE)

    cast = lambda a: a.astype(compute_dtype)
    w1a = cast(w1[:h])                         # node_attr half of W1
    w1b = cast(w1[h:])                         # node_embedding half of W1
    w2c = cast(w2)
    w3c = jnp.zeros((h, out_p), compute_dtype).at[:, :out_size].set(cast(w3))
    b1c = b1.reshape(1, h).astype(jnp.float32)
    b2c = b2.reshape(1, h).astype(jnp.float32)
    b3c = jnp.zeros((1, out_p), jnp.float32).at[:, :out_size].set(
        b3.reshape(1, out_size).astype(jnp.float32))
    return (w1a, w1b, b1c, w2c, b2c, w3c, b3c, out_size)


def decoder_forward(node_attr, node_embedding, prepared, *, block_m=1024):
    """node_attr: [N, H] f32, node_embedding: [N, H] f32 -> [N, OUT] f32."""
    w1a, w1b, b1c, w2c, b2c, w3c, b3c, out_size = prepared
    n, h = node_attr.shape
    assert node_embedding.shape == (n, h)
    assert w1a.shape == (h, h)
    out_p = w3c.shape[1]

    # Row tile: big tiles amortize the ~0.35us/step overhead. Small-N path
    # keeps >= 4 grid steps (>= 2 per TensorCore on v7x) so prefetch/writeback
    # of the next block still overlaps. Multiple of 16 keeps bf16 sublane tiles.
    bm = block_m
    if n < 4 * bm:
        bm = max(16, _round_up(pl.cdiv(n, 4), 16))

    grid = (pl.cdiv(n, bm),)                   # ragged last tile handled by Pallas
    row = lambda width: pl.BlockSpec((bm, width), lambda i: (i, 0))
    full = lambda shape: pl.BlockSpec(shape, lambda i: (0, 0))

    cost = pl.CostEstimate(
        flops=2 * n * (2 * h * h + h * h + h * out_p),
        transcendentals=2 * n * h,
        bytes_accessed=(2 * n * h * 4                    # f32 activation reads
                        + (3 * h * h + h * out_p) * 2    # bf16 weights
                        + (2 * h + out_p) * 4            # f32 biases
                        + n * out_size * 4),             # narrow f32 output
    )

    kernel = functools.partial(_decoder_kernel, out_size=out_size)

    return pl.pallas_call(
        kernel,
        out_shape=jax.ShapeDtypeStruct((n, out_size), jnp.float32),
        grid_spec=pltpu.PrefetchScalarGridSpec(
            num_scalar_prefetch=0,
            grid=grid,
            in_specs=[
                row(h),                 # node_attr tile (f32)
                row(h),                 # node_embedding tile (f32)
                full((h, h)),           # W1[:H]  (bf16)
                full((h, h)),           # W1[H:]  (bf16)
                full((1, h)),           # b1 (f32)
                full((h, h)),           # W2 (bf16)
                full((1, h)),           # b2 (f32)
                full((h, out_p)),       # W3 zero-padded to 128 lanes (bf16)
                full((1, out_p)),       # b3 zero-padded (f32)
            ],
            out_specs=pl.BlockSpec((bm, out_size), lambda i: (i, 0)),
        ),
        compiler_params=pltpu.CompilerParams(
            dimension_semantics=("parallel",)),
        cost_estimate=cost,
    )(node_attr, node_embedding, w1a, w1b, b1c, w2c, b2c, w3c, b3c)


def init_decoder_params(key, cell_hidden_size=128, node_output_size=2,
                        dtype=jnp.float32):
    """PyTorch-Linear-style init (uniform +/- 1/sqrt(fan_in)); W stored as [in, out]."""
    in_size = 2 * cell_hidden_size
    h = cell_hidden_size
    ks = jax.random.split(key, 6)

    def lin(kw, kb, fan_in, fan_out):
        bound = 1.0 / (fan_in ** 0.5)
        w = jax.random.uniform(kw, (fan_in, fan_out), dtype, -bound, bound)
        b = jax.random.uniform(kb, (1, fan_out), dtype, -bound, bound)
        return w, b

    w1, b1 = lin(ks[0], ks[1], in_size, h)
    w2, b2 = lin(ks[2], ks[3], h, h)
    w3, b3 = lin(ks[4], ks[5], h, node_output_size)
    return (w1, b1, w2, b2, w3, b3)


def decoder_reference(node_attr, node_embedding, params,
                      compute_dtype=jnp.bfloat16):
    """Pure-JAX reference mirroring the kernel's bf16-operand / f32-accumulate math."""
    w1, b1, w2, b2, w3, b3 = params
    q = lambda a: a.astype(compute_dtype).astype(jnp.float32)  # emulate bf16 rounding
    x = jnp.concatenate([q(node_attr), q(node_embedding)], axis=1)
    h = x @ q(w1) + b1
    h = h * jax.nn.sigmoid(h)
    h = q(h) @ q(w2) + b2
    h = h * jax.nn.sigmoid(h)
    return q(h) @ q(w3) + b3


if __name__ == "__main__":
    CELL_HIDDEN = 128      # cell_hidden_size (module default)
    NODE_OUT = 2           # node_output_size
    N = 200                # node count NOT a tile multiple -> exercises ragged grid

    key = jax.random.PRNGKey(0)
    k_attr, k_emb, k_params = jax.random.split(key, 3)

    node_attr = jax.random.normal(k_attr, (N, CELL_HIDDEN), jnp.float32)
    node_embedding = jax.random.normal(k_emb, (N, CELL_HIDDEN), jnp.float32)
    params = init_decoder_params(k_params, CELL_HIDDEN, NODE_OUT)

    prepared = prepare_decoder_params(params)          # one-time weight prep
    out = decoder_forward(node_attr, node_embedding, prepared)
    out = jax.block_until_ready(out)

    ref = decoder_reference(node_attr, node_embedding, params)
    assert out.shape == (N, NODE_OUT)
    assert jnp.allclose(out, ref, atol=1e-2, rtol=1e-2), "mismatch vs JAX reference"

    print("KERNEL_OK")
</pallas_src>

<mosaic_0001>
module attributes {stable_mosaic.version = 11 : i64} {
  func.func @_decoder_kernel(%arg0: i32, %arg1: memref<64x128xf32, #tpu.memory_space<vmem>>, %arg2: memref<64x128xf32, #tpu.memory_space<vmem>>, %arg3: memref<128x128xbf16, #tpu.memory_space<vmem>>, %arg4: memref<128x128xbf16, #tpu.memory_space<vmem>>, %arg5: memref<1x128xf32, #tpu.memory_space<vmem>>, %arg6: memref<128x128xbf16, #tpu.memory_space<vmem>>, %arg7: memref<1x128xf32, #tpu.memory_space<vmem>>, %arg8: memref<128x128xbf16, #tpu.memory_space<vmem>>, %arg9: memref<1x128xf32, #tpu.memory_space<vmem>>, %arg10: memref<64x2xf32, #tpu.memory_space<vmem>>) attributes {dimension_semantics = [#tpu.dimension_semantics<parallel>], iteration_bounds = array<i64: 4>, scalar_prefetch = 0 : i64, scratch_operands = 0 : i64, tpu.core_type = #tpu.core_type<tc>, window_params = [{transform_indices = @transform_0, window_bounds = array<i64: 64, 128>}, {transform_indices = @transform_1, window_bounds = array<i64: 64, 128>}, {pipeline_mode = #tpu.pipeline_mode<synchronous>, transform_indices = @transform_2, window_bounds = array<i64: 128, 128>}, {pipeline_mode = #tpu.pipeline_mode<synchronous>, transform_indices = @transform_3, window_bounds = array<i64: 128, 128>}, {pipeline_mode = #tpu.pipeline_mode<synchronous>, transform_indices = @transform_4, window_bounds = array<i64: 1, 128>}, {pipeline_mode = #tpu.pipeline_mode<synchronous>, transform_indices = @transform_5, window_bounds = array<i64: 128, 128>}, {pipeline_mode = #tpu.pipeline_mode<synchronous>, transform_indices = @transform_6, window_bounds = array<i64: 1, 128>}, {pipeline_mode = #tpu.pipeline_mode<synchronous>, transform_indices = @transform_7, window_bounds = array<i64: 128, 128>}, {pipeline_mode = #tpu.pipeline_mode<synchronous>, transform_indices = @transform_8, window_bounds = array<i64: 1, 128>}, {transform_indices = @transform_9, window_bounds = array<i64: 64, 2>}]} {
    %c0 = arith.constant 0 : index
    %c0_0 = arith.constant 0 : index
    %0 = vector.load %arg1[%c0, %c0_0] : memref<64x128xf32, #tpu.memory_space<vmem>>, vector<64x128xf32>
    %1 = arith.truncf %0 : vector<64x128xf32> to vector<64x128xbf16>
    %c0_1 = arith.constant 0 : index
    %c0_2 = arith.constant 0 : index
    %2 = vector.load %arg2[%c0_1, %c0_2] : memref<64x128xf32, #tpu.memory_space<vmem>>, vector<64x128xf32>
    %3 = arith.truncf %2 : vector<64x128xf32> to vector<64x128xbf16>
    %c0_3 = arith.constant 0 : index
    %c0_4 = arith.constant 0 : index
    %4 = vector.load %arg3[%c0_3, %c0_4] : memref<128x128xbf16, #tpu.memory_space<vmem>>, vector<128x128xbf16>
    %cst = arith.constant dense<0.000000e+00> : vector<64x128xf32>
    %5 = tpu.matmul %1, %4, %cst {dimension_numbers = #tpu.dot_dimension_numbers<[1], [0], [0], [1], [0, 0, 1, 1], [], []>} : vector<64x128xbf16>, vector<128x128xbf16>, vector<64x128xf32> -> vector<64x128xf32>
    %c0_5 = arith.constant 0 : index
    %c0_6 = arith.constant 0 : index
    %6 = vector.load %arg4[%c0_5, %c0_6] : memref<128x128xbf16, #tpu.memory_space<vmem>>, vector<128x128xbf16>
    %cst_7 = arith.constant dense<0.000000e+00> : vector<64x128xf32>
    %7 = tpu.matmul %3, %6, %cst_7 {dimension_numbers = #tpu.dot_dimension_numbers<[1], [0], [0], [1], [0, 0, 1, 1], [], []>} : vector<64x128xbf16>, vector<128x128xbf16>, vector<64x128xf32> -> vector<64x128xf32>
    %8 = arith.addf %5, %7 : vector<64x128xf32>
    %c0_8 = arith.constant 0 : index
    %c0_9 = arith.constant 0 : index
    %9 = vector.load %arg5[%c0_8, %c0_9] : memref<1x128xf32, #tpu.memory_space<vmem>>, vector<1x128xf32>
    %10 = vector.broadcast %9 : vector<1x128xf32> to vector<64x128xf32>
    %11 = arith.addf %8, %10 : vector<64x128xf32>
    %12 = arith.negf %11 : vector<64x128xf32>
    %13 = math.exp %12 : vector<64x128xf32>
    %cst_10 = arith.constant 1.000000e+00 : f32
    %14 = vector.broadcast %cst_10 : f32 to vector<64x128xf32>
    %15 = arith.addf %14, %13 : vector<64x128xf32>
    %16 = arith.divf %14, %15 : vector<64x128xf32>
    %17 = arith.mulf %11, %16 : vector<64x128xf32>
    %18 = arith.truncf %17 : vector<64x128xf32> to vector<64x128xbf16>
    %c0_11 = arith.constant 0 : index
    %c0_12 = arith.constant 0 : index
    %19 = vector.load %arg6[%c0_11, %c0_12] : memref<128x128xbf16, #tpu.memory_space<vmem>>, vector<128x128xbf16>
    %cst_13 = arith.constant dense<0.000000e+00> : vector<64x128xf32>
    %20 = tpu.matmul %18, %19, %cst_13 {dimension_numbers = #tpu.dot_dimension_numbers<[1], [0], [0], [1], [0, 0, 1, 1], [], []>} : vector<64x128xbf16>, vector<128x128xbf16>, vector<64x128xf32> -> vector<64x128xf32>
    %c0_14 = arith.constant 0 : index
    %c0_15 = arith.constant 0 : index
    %21 = vector.load %arg7[%c0_14, %c0_15] : memref<1x128xf32, #tpu.memory_space<vmem>>, vector<1x128xf32>
    %22 = vector.broadcast %21 : vector<1x128xf32> to vector<64x128xf32>
    %23 = arith.addf %20, %22 : vector<64x128xf32>
    %24 = arith.negf %23 : vector<64x128xf32>
    %25 = math.exp %24 : vector<64x128xf32>
    %cst_16 = arith.constant 1.000000e+00 : f32
    %26 = vector.broadcast %cst_16 : f32 to vector<64x128xf32>
    %27 = arith.addf %26, %25 : vector<64x128xf32>
    %28 = arith.divf %26, %27 : vector<64x128xf32>
    %29 = arith.mulf %23, %28 : vector<64x128xf32>
    %30 = arith.truncf %29 : vector<64x128xf32> to vector<64x128xbf16>
    %c0_17 = arith.constant 0 : index
    %c0_18 = arith.constant 0 : index
    %31 = vector.load %arg8[%c0_17, %c0_18] : memref<128x128xbf16, #tpu.memory_space<vmem>>, vector<128x128xbf16>
    %cst_19 = arith.constant dense<0.000000e+00> : vector<64x128xf32>
    %32 = tpu.matmul %30, %31, %cst_19 {dimension_numbers = #tpu.dot_dimension_numbers<[1], [0], [0], [1], [0, 0, 1, 1], [], []>} : vector<64x128xbf16>, vector<128x128xbf16>, vector<64x128xf32> -> vector<64x128xf32>
    %c0_20 = arith.constant 0 : index
    %c0_21 = arith.constant 0 : index
    %33 = vector.load %arg9[%c0_20, %c0_21] : memref<1x128xf32, #tpu.memory_space<vmem>>, vector<1x128xf32>
    %34 = vector.broadcast %33 : vector<1x128xf32> to vector<64x128xf32>
    %35 = arith.addf %32, %34 : vector<64x128xf32>
    %36 = vector.extract_strided_slice %35 {offsets = [0, 0], sizes = [64, 2], strides = [1, 1]} : vector<64x128xf32> to vector<64x2xf32>
    %c0_22 = arith.constant 0 : index
    %c0_23 = arith.constant 0 : index
    %37 = vector.load %arg10[%c0_22, %c0_23] : memref<64x2xf32, #tpu.memory_space<vmem>>, vector<64x2xf32>
    tpu.vector_store %arg10[%c0_22, %c0_23], %36 {strides = array<i32>} : memref<64x2xf32, #tpu.memory_space<vmem>>, vector<64x2xf32>,
    return
  }
  func.func @transform_0(%arg0: i32) -> (i32, i32) {
    %c0_i32 = arith.constant 0 : i32
    %c0_i32_0 = arith.constant 0 : i32
    return %arg0, %c0_i32 : i32, i32
  }
  func.func @transform_1(%arg0: i32) -> (i32, i32) {
    %c0_i32 = arith.constant 0 : i32
    %c0_i32_0 = arith.constant 0 : i32
    return %arg0, %c0_i32 : i32, i32
  }
  func.func @transform_2(%arg0: i32) -> (i32, i32) {
    %c0_i32 = arith.constant 0 : i32
    %c0_i32_0 = arith.constant 0 : i32
    %c0_i32_1 = arith.constant 0 : i32
    return %c0_i32, %c0_i32_0 : i32, i32
  }
  func.func @transform_3(%arg0: i32) -> (i32, i32) {
    %c0_i32 = arith.constant 0 : i32
    %c0_i32_0 = arith.constant 0 : i32
    %c0_i32_1 = arith.constant 0 : i32
    return %c0_i32, %c0_i32_0 : i32, i32
  }
  func.func @transform_4(%arg0: i32) -> (i32, i32) {
    %c0_i32 = arith.constant 0 : i32
    %c0_i32_0 = arith.constant 0 : i32
    %c0_i32_1 = arith.constant 0 : i32
    return %c0_i32, %c0_i32_0 : i32, i32
  }
  func.func @transform_5(%arg0: i32) -> (i32, i32) {
    %c0_i32 = arith.constant 0 : i32
    %c0_i32_0 = arith.constant 0 : i32
    %c0_i32_1 = arith.constant 0 : i32
    return %c0_i32, %c0_i32_0 : i32, i32
  }
  func.func @transform_6(%arg0: i32) -> (i32, i32) {
    %c0_i32 = arith.constant 0 : i32
    %c0_i32_0 = arith.constant 0 : i32
    %c0_i32_1 = arith.constant 0 : i32
    return %c0_i32, %c0_i32_0 : i32, i32
  }
  func.func @transform_7(%arg0: i32) -> (i32, i32) {
    %c0_i32 = arith.constant 0 : i32
    %c0_i32_0 = arith.constant 0 : i32
    %c0_i32_1 = arith.constant 0 : i32
    return %c0_i32, %c0_i32_0 : i32, i32
  }
  func.func @transform_8(%arg0: i32) -> (i32, i32) {
    %c0_i32 = arith.constant 0 : i32
    %c0_i32_0 = arith.constant 0 : i32
    %c0_i32_1 = arith.constant 0 : i32
    return %c0_i32, %c0_i32_0 : i32, i32
  }
  func.func @transform_9(%arg0: i32) -> (i32, i32) {
    %c0_i32 = arith.constant 0 : i32
    %c0_i32_0 = arith.constant 0 : i32
    return %arg0, %c0_i32 : i32, i32
  }
}

</mosaic_0001>

<bundles_post_ra>
// kernel: tpu_custom_call.1
= control target key start
LH: loop header
LB: loop body
LE: loop exit
PB: predicated region body
PF: predicated region fallthrough
CT: control target
= control target key end

     0   :  { %s2728_s0 = inlined_call_operand.hbm [shape: f32[200,128], index: 0, kind: input, shape index: {}]   ;;  %s2729_s1 = inlined_call_operand.hbm [shape: f32[200,128], index: 1, kind: input, shape index: {}]   ;;  %s2730_s2 = inlined_call_operand.hbm [shape: bf16[128,128], index: 2, kind: input, shape index: {}]   ;;  %s2731_s3 = inlined_call_operand.hbm [shape: bf16[128,128], index: 3, kind: input, shape index: {}]   ;;  %s2732_s4 = inlined_call_operand.vmem [shape: f32[1,128], index: 4, kind: input, shape index: {}]   ;;  %s2733_s5 = inlined_call_operand.hbm [shape: bf16[128,128], index: 5, kind: input, shape index: {}]   ;;  %s2734_s6 = inlined_call_operand.vmem [shape: f32[1,128], index: 6, kind: input, shape index: {}]   ;;  %s2735_s7 = inlined_call_operand.hbm [shape: bf16[128,128], index: 7, kind: input, shape index: {}]   ;;  %s2736_s8 = inlined_call_operand.vmem [shape: f32[1,128], index: 8, kind: input, shape index: {}]   ;;  %s2737_s9 = inlined_call_operand.vmem [shape: f32[200,2], index: 9, kind: output, shape index: {}]  }
   0x1   :  { %2744 = sst [smem:[#allocation21_spill]] %s2736_s8 }
   0x2   :  { %2745 = sst [smem:[#allocation22_spill]] %s2737_s9 }
   0x3   :  { %14 = vsyncpa [#allocation3], 0 }
   0x4   :  { %16 = vsyncpa [#allocation3 + $0x1], 0 }
   0x5   :  { %17 = vsyncpa [#allocation5], 0 }
   0x6   :  { %19 = vsyncpa [#allocation5 + $0x1], 0 }
   0x7   :  { %20 = vsyncpa [#allocation8], 0 }
   0x8   :  { %21 = vsyncpa [#allocation11], 0  ;;  %s2327_s30 = smov 0   ;;  %s2329_s10 = smov 0  }
   0x9   :  { %s2331_s11 = smov 0   ;;  %s2333_s12 = smov 0  }
   0xa LB: > { %s2346_s13 = sadd.s32 4294967295, %s2231_s12   ;;  %s2349_s14 = sadd.s32 1, %s2231_s12   ;;  %s2231_s12 = sphi %s2333_s12, %s2772_s12   ;;  %s2227_s11 = sphi %s2331_s11, %s2776_s11   ;;  %s2223_s10 = sphi %s2329_s10, %s2775_s10   ;;  %s2219_s30 = sphi %s2327_s30, %s2774_s30  }
   0xb   : > { %2746 = sst [smem:[#allocation18_spill]] %s2349_s14  ;;  %s31_s15 = ssub.s32 %s2231_s12, %s2349_s14 }
   0xc   : > { %s34_s16 = sadd.s32 1, %s2227_s11  ;;  %p32_p0 = scmp.eq.s32.totalorder %s31_s15, 0 }
   0xd   : > { %p41_p1 = scmp.ne.s32.totalorder %s2227_s11, %s2223_s10  ;;  %p42_p2 = scmp.eq.s32.totalorder %s2231_s12, 0 }
   0xe   : > { %p47_p3 = scmp.ne.s32.totalorder %s2223_s10, %s2219_s30  ;;  %p2738_p5 = scmp.eq.s32.totalorder %s2346_s13, 0 }
   0xf   : > { %s2359_s17 = scalar_select %p32_p0, %s2227_s11, %s34_s16  }
  0x10   : > { %p2361_p4 = por %p42_p2, %p41_p1  ;;  %p244_p6 = scmp.eq.s32.totalorder %s2346_s13, 3 }
  0x11   : > { %2747 = sst [smem:[#allocation19_spill]] %s2359_s17  ;;  %p1487_p7 = scmp.ge.s32.totalorder %s2231_s12, 1 }
  0x12   : > { %s2748_s18 = scalar_select %p2361_p4, 1, 0 }
  0x13   : > { %p2370_p8 = por %p2738_p5, %p47_p3  ;;  %p257_p9 = scmp.lt.s32.totalorder %s2231_s12, 5 }
  0x14   : > { %p2375_p10 = por %p244_p6, %p41_p1  ;;  %s2265_s22 = smov [#allocation7]  }
  0x15   : > { %s2749_s19 = scalar_select %p2370_p8, 1, 0 }
  0x16   : > { %s2750_s20 = scalar_select %p2375_p10, 1, 0 }
  0x17   : > { %p2379_p11 = pnand %p1487_p7, %p257_p9  ;;  %s282_s23 = sshll.u32 %s2265_s22, 4  ;;  %s2385_s23 = int_to_ptr.vmem [resolvable:$true] %s282_s23 }
  0x18   : > { %2751 = sst [smem:[#allocation20_spill]] %s2750_s20  ;;  %s2266_s25 = smov [#allocation6]  }
  0x19   : > { %s2752_s21 = scalar_select %p2379_p11, 1, 0 }
  0x1a   : > { %p1758_p12 = pneg %p2379_p11  ;;  %s269_s26 = sshll.u32 %s2266_s25, 4  ;;  %s2393_s26 = int_to_ptr.vmem [resolvable:$true] %s269_s26 }
  0x1b   : > { %s2267_s27 = smov [#allocation9]   ;;  %s1981_s15 = scalar_lea.hbm %s2731_s3, 1024 }
  0x1c   : > { %p2389_p13 = pnand %p1758_p12, %p2738_p5  ;;  %s2395_s28 = sshll.u32 %s2267_s27, 4  ;;  %s299_s28 = int_to_ptr.vmem [resolvable:$true] %s2395_s28 }
  0x1d   : > { %p1982_p0 = scmp.ne.s32.totalorder %s2731_s3, %s1981_s15  ;;  %p1988_p6 = scmp.lt.u32.totalorder %s1981_s15, %s2731_s3 }
  0x1e   : > { %p2405_p1 = pneg %p2389_p13 }
  0x20   : > { %p1984_p2 = pnand %p2405_p1, %p1982_p0 }
  0x22   : > { %p1985_p3 = pneg %p1984_p2 }
  0x24   : > { %p1990_p7 = pnand %p1988_p6, %p1985_p3 }
  0x26   : > { %1993 = shalt.err (!%p1990_p7)
}
  0x27   : > { %s1994_s29 = scalar_lea.vmem %s2385_s23, 1024  ;;  %p2002_p10 = scmp.lt.s32.totalorder %s2385_s23, %s2385_s23 }
  0x28   : > { %p1995_p9 = scmp.ne.s32.totalorder %s2385_s23, %s1994_s29  ;;  %p2003_p8 = scmp.lt.s32.totalorder %s1994_s29, %s1994_s29 }
  0x2a   : > { %p1997_p12 = pnand %p1995_p9, %p2405_p1  ;;  %p2004_p0 = por %p2003_p8, %p2002_p10 }
  0x2c   : > { %p1998_p5 = pneg %p1997_p12 }
  0x2e   : > { %p2005_p2 = pnand %p2004_p0, %p1998_p5 }
  0x30   : > { %2008 = shalt.err (!%p2005_p2)
}
  0x31   : > { %s2268_s30 = smov 64   ;;  %s2269_s15 = smov 4  }
  0x32   : > { %1764 = dma.hbm_to_vmem [thread:$0]  (!%p2389_p13), %s2731_s3, 1024, %s2385_s23, [#allocation8], %s2268_s30, %s2268_s30, %s2269_s15  }
  0x33   : > { %s2009_s29 = scalar_lea.hbm %s2730_s2, 1024 }
  0x34   : > { %p2010_p5 = scmp.ne.s32.totalorder %s2730_s2, %s2009_s29  ;;  %p2016_p3 = scmp.lt.u32.totalorder %s2009_s29, %s2730_s2 }
  0x36   : > { %p2012_p8 = pnand %p2010_p5, %p2405_p1 }
  0x38   : > { %p2013_p10 = pneg %p2012_p8 }
  0x3a   : > { %p2018_p6 = pnand %p2016_p3, %p2013_p10 }
  0x3c   : > { %2021 = shalt.err (!%p2018_p6)
}
  0x3d   : > { %s2022_s23 = scalar_lea.vmem %s2393_s26, 1024  ;;  %p2030_p0 = scmp.lt.s32.totalorder %s2393_s26, %s2393_s26 }
  0x3e   : > { %p2023_p7 = scmp.ne.s32.totalorder %s2393_s26, %s2022_s23  ;;  %p2031_p2 = scmp.lt.s32.totalorder %s2022_s23, %s2022_s23 }
  0x40   : > { %p2025_p9 = pnand %p2023_p7, %p2405_p1  ;;  %p2032_p5 = por %p2031_p2, %p2030_p0 }
  0x42   : > { %p2026_p12 = pneg %p2025_p9 }
  0x44   : > { %p2033_p8 = pnand %p2032_p5, %p2026_p12 }
  0x46   : > { %2036 = shalt.err (!%p2033_p8)
}
  0x47   : > { %1761 = dma.hbm_to_vmem [thread:$0]  (!%p2389_p13), %s2730_s2, 1024, %s2393_s26, [#allocation5], %s2268_s30, %s2268_s30, %s2269_s15  }
  0x48   : > { %s2037_s16 = scalar_lea.hbm %s2733_s5, 1024 }
  0x49   : > { %p2038_p10 = scmp.ne.s32.totalorder %s2733_s5, %s2037_s16  ;;  %p2044_p7 = scmp.lt.u32.totalorder %s2037_s16, %s2733_s5 }
  0x4b   : > { %p2040_p3 = pnand %p2038_p10, %p2405_p1 }
  0x4d   : > { %p2041_p6 = pneg %p2040_p3 }
  0x4f   : > { %p2046_p9 = pnand %p2044_p7, %p2041_p6 }
  0x51   : > { %2049 = shalt.err (!%p2046_p9)
}
  0x52   : > { %s2050_s23 = scalar_lea.vmem %s299_s28, 1024  ;;  %p2058_p5 = scmp.lt.s32.totalorder %s299_s28, %s299_s28 }
  0x53   : > { %p2051_p12 = scmp.ne.s32.totalorder %s299_s28, %s2050_s23  ;;  %p2059_p8 = scmp.lt.s32.totalorder %s2050_s23, %s2050_s23 }
  0x55   : > { %p2053_p0 = pnand %p2051_p12, %p2405_p1  ;;  %p2060_p11 = por %p2059_p8, %p2058_p5 }
  0x57   : > { %p2054_p2 = pneg %p2053_p0 }
  0x59   : > { %p2061_p4 = pnand %p2060_p11, %p2054_p2 }
  0x5b   : > { %2064 = shalt.err (!%p2061_p4)
}
  0x5c   : > { %1767 = dma.hbm_to_vmem [thread:$0]  (!%p2389_p13), %s2733_s5, 1024, %s299_s28, [#allocation8], %s2268_s30, %s2268_s30, %s2269_s15  }
  0x5d   : > { %s2270_s9 = smov [#allocation10]   ;;  %s2065_s22 = scalar_lea.hbm %s2735_s7, 1024 }
  0x5e   : > { %s314_s14 = sshll.u32 %s2270_s9, 4  ;;  %p2066_p4 = scmp.ne.s32.totalorder %s2735_s7, %s2065_s22  ;;  %s315_s14 = int_to_ptr.vmem [resolvable:$true] %s314_s14 }
  0x5f   : > { %p2072_p3 = scmp.lt.u32.totalorder %s2065_s22, %s2735_s7 }
  0x60   : > { %p2068_p11 = pnand %p2066_p4, %p2405_p1 }
  0x62   : > { %p2069_p10 = pneg %p2068_p11 }
  0x64   : > { %p2074_p6 = pnand %p2072_p3, %p2069_p10 }
  0x66   : > { %2077 = shalt.err (!%p2074_p6)
}
  0x67   : > { %s2078_s28 = scalar_lea.vmem %s315_s14, 1024  ;;  %p2086_p0 = scmp.lt.s32.totalorder %s315_s14, %s315_s14 }
  0x68   : > { %p2079_p7 = scmp.ne.s32.totalorder %s315_s14, %s2078_s28  ;;  %p2087_p2 = scmp.lt.s32.totalorder %s2078_s28, %s2078_s28 }
  0x6a   : > { %p2081_p9 = pnand %p2079_p7, %p2405_p1  ;;  %p2088_p5 = por %p2087_p2, %p2086_p0 }
  0x6c   : > { %p2082_p12 = pneg %p2081_p9 }
  0x6e   : > { %p2089_p8 = pnand %p2088_p5, %p2082_p12 }
  0x70   : > { %2092 = shalt.err (!%p2089_p8)
}
  0x71   : > { %1770 = dma.hbm_to_vmem [thread:$0]  (!%p2389_p13), %s2735_s7, 1024, %s315_s14, [#allocation11], %s2268_s30, %s2268_s30, %s2269_s15  }
  0x72   : > { %p1492_p4 = scmp.ge.s32.totalorder %s2231_s12, 4 }
  0x73   : > { %p2755_p1 = scmp.ne.s32.totalorder (!%p1492_p4), %s2748_s18, 0 }
  0x74   : > { %327 = sbr.rel (%p1492_p4) target bundleno = 195 (0xc3), region = 44 }
  0x7b   : > { %330 = sbr.rel (!%p2755_p1) target bundleno = 158 (0x9e), region = 48  ;;  %s331_s17 = sand.u32 (%p2755_p1), 1, %s2227_s11  }
  0x7c   : > { %s1494_s9 = sshll.u32 (%p2755_p1), %s2231_s12, 3  ;;  %s1493_s20 = sshll.u32 (%p2755_p1), %s331_s17, 6 }
  0x7d   : > { %s337_s16 = ssub.s32 (%p2755_p1), 25, %s1494_s9  ;;  %s2506_s25 = scalar_lea.sflag (%p2755_p1), [#allocation3], %s331_s17 }
  0x7e   : > { %p338_p11 = scmp.lt.s32.totalorder (%p2755_p1), %s337_s16, 8  ;;  %s335_s30 = scalar_lea.vmem (%p2755_p1), [#allocation2], %s1493_s20 }
  0x82   : > { %s2778_s16 = smov (!%p338_p11, %s337_s16), 8 }
  0x83   : > { %s2503_s24 = sshll.u32 %s2778_s16, 7 }
  0x84   : > { %s342_s22 = ssub.s32 1024, %s2503_s24 }
  0x85   : > { %343 = vsyncadd %s2506_s25, %s342_s22  ;;  %p1496_p13 = scmp.ne.s32.totalorder %s2503_s24, 0  ;;  %s1583_s15 = sshll.u32 %s2231_s12, 10 }
  0x86   : > { %s2514_s29 = scalar_lea.hbm %s2728_s0, %s1583_s15  ;;  %s348_s23 = sshll.u32 %s335_s30, 4  ;;  %s2516_s23 = int_to_ptr.vmem [resolvable:$true] %s348_s23 }
  0x87   : > { %s2093_s28 = scalar_lea.hbm %s2514_s29, %s2503_s24  ;;  %s2097_s17 = scalar_lea.hbm %s2728_s0, 3200 }
  0x88   : > { %p2094_p10 = scmp.ne.s32.totalorder %s2514_s29, %s2093_s28  ;;  %p2098_p7 = scmp.lt.u32.totalorder %s2514_s29, %s2728_s0 }
  0x89   : > { %p2099_p9 = scmp.lt.u32.totalorder %s2097_s17, %s2093_s28  ;;  %p2101_p0 = scmp.lt.u32.totalorder %s2093_s28, %s2514_s29 }
  0x8a   : > { %p2095_p3 = pnand %p2094_p10, %p1496_p13 }
  0x8b   : > { %p2100_p12 = por %p2099_p9, %p2098_p7 }
  0x8c   : > { %p2096_p6 = pneg %p2095_p3 }
  0x8d   : > { %p2102_p2 = por %p2101_p0, %p2100_p12 }
  0x8f   : > { %p2103_p5 = pnand %p2102_p2, %p2096_p6 }
  0x91   : > { %2106 = shalt.err (!%p2103_p5)
}
  0x92   : > { %s2107_s16 = scalar_lea.vmem %s2516_s23, %s2503_s24  ;;  %s2271_s22 = smov [#allocation2]  }
  0x93   : > { %p2108_p8 = scmp.ne.s32.totalorder %s2516_s23, %s2107_s16  ;;  %s2111_s30 = sshll.u32 %s2271_s22, 4  ;;  %s2112_s30 = int_to_ptr.vmem [resolvable:$false] %s2111_s30 }
  0x94   : > { %s2113_s15 = scalar_lea.vmem %s2112_s30, 2048  ;;  %p2114_p11 = scmp.lt.s32.totalorder %s2516_s23, %s2112_s30 }
  0x95   : > { %p2109_p4 = pnand %p2108_p8, %p1496_p13  ;;  %p2115_p10 = scmp.lt.s32.totalorder %s2113_s15, %s2107_s16 }
  0x97   : > { %p2110_p1 = pneg %p2109_p4  ;;  %p2116_p3 = por %p2115_p10, %p2114_p11 }
  0x99   : > { %p2117_p7 = pnand %p2116_p3, %p2110_p1 }
  0x9b   : > { %2120 = shalt.err (!%p2117_p7)
}
  0x9c   : > { %s2272_s14 = smov 128   ;;  %s2273_s27 = smov 8  }
  0x9d   : > { %354 = dma.hbm_to_vmem [thread:$0]  (%p1496_p13), %s2514_s29, %s2503_s24, %s2516_s23, %s2506_s25, %s2272_s14, %s2272_s14, %s2273_s27  }
  0x9e PF: > { %p2756_p6 = scmp.ne.s32.totalorder %s2748_s18, 0 }
  0x9f   : > { %s358_s28 = sand.u32 (%p2756_p6), 1, %s2231_s12   ;;  %s360_s26 = sand.u32 (%p2756_p6), 1, %s2227_s11  }
  0xa0   : > { %357 = sbr.rel (!%p2756_p6) target bundleno = 195 (0xc3), region = 52  ;;  %s1500_s8 = sshll.u32 (%p2756_p6), %s360_s26, 6 }
  0xa1   : > { %s1501_s17 = sshll.u32 (%p2756_p6), %s2231_s12, 3  ;;  %s2551_s22 = scalar_lea.sflag (%p2756_p6), [#allocation5], %s358_s28 }
  0xa2   : > { %s364_s9 = ssub.s32 (%p2756_p6), 25, %s1501_s17  ;;  %s362_s24 = scalar_lea.vmem (%p2756_p6), [#allocation4], %s1500_s8 }
  0xa3   : > { %p365_p9 = scmp.lt.s32.totalorder (%p2756_p6), %s364_s9, 8 }
  0xa7   : > { %s2780_s9 = smov (!%p365_p9, %s364_s9), 8 }
  0xa8   : > { %s2548_s20 = sshll.u32 %s2780_s9, 7 }
  0xa9   : > { %s369_s16 = ssub.s32 1024, %s2548_s20 }
  0xaa   : > { %370 = vsyncadd %s2551_s22, %s369_s16  ;;  %p1503_p13 = scmp.ne.s32.totalorder %s2548_s20, 0  ;;  %s1584_s18 = sshll.u32 %s2231_s12, 10 }
  0xab   : > { %s2559_s23 = scalar_lea.hbm %s2729_s1, %s1584_s18  ;;  %s375_s30 = sshll.u32 %s362_s24, 4  ;;  %s2561_s30 = int_to_ptr.vmem [resolvable:$true] %s375_s30 }
  0xac   : > { %s2121_s15 = scalar_lea.hbm %s2559_s23, %s2548_s20  ;;  %s2125_s12 = scalar_lea.hbm %s2729_s1, 3200 }
  0xad   : > { %p2122_p12 = scmp.ne.s32.totalorder %s2559_s23, %s2121_s15  ;;  %p2126_p5 = scmp.lt.u32.totalorder %s2559_s23, %s2729_s1 }
  0xae   : > { %p2127_p8 = scmp.lt.u32.totalorder %s2125_s12, %s2121_s15  ;;  %p2129_p1 = scmp.lt.u32.totalorder %s2121_s15, %s2559_s23 }
  0xaf   : > { %p2123_p0 = pnand %p2122_p12, %p1503_p13 }
  0xb0   : > { %p2128_p4 = por %p2127_p8, %p2126_p5 }
  0xb1   : > { %p2124_p2 = pneg %p2123_p0 }
  0xb2   : > { %p2130_p11 = por %p2129_p1, %p2128_p4 }
  0xb4   : > { %p2131_p10 = pnand %p2130_p11, %p2124_p2 }
  0xb6   : > { %2134 = shalt.err (!%p2131_p10)
}
  0xb7   : > { %s2135_s8 = scalar_lea.vmem %s2561_s30, %s2548_s20  ;;  %s2274_s17 = smov [#allocation4]  }
  0xb8   : > { %p2136_p3 = scmp.ne.s32.totalorder %s2561_s30, %s2135_s8  ;;  %s2139_s9 = sshll.u32 %s2274_s17, 4  ;;  %s2140_s9 = int_to_ptr.vmem [resolvable:$false] %s2139_s9 }
  0xb9   : > { %s2141_s16 = scalar_lea.vmem %s2140_s9, 2048  ;;  %p2142_p9 = scmp.lt.s32.totalorder %s2561_s30, %s2140_s9 }
  0xba   : > { %p2137_p7 = pnand %p2136_p3, %p1503_p13  ;;  %p2143_p12 = scmp.lt.s32.totalorder %s2141_s16, %s2135_s8 }
  0xbc   : > { %p2138_p6 = pneg %p2137_p7  ;;  %p2144_p0 = por %p2143_p12, %p2142_p9 }
  0xbe   : > { %p2145_p5 = pnand %p2144_p0, %p2138_p6 }
  0xc0   : > { %2148 = shalt.err (!%p2145_p5)
}
  0xc1   : > { %s2275_s24 = smov 128   ;;  %s2276_s18 = smov 8  }
  0xc2   : > { %381 = dma.hbm_to_vmem [thread:$0]  (%p1503_p13), %s2559_s23, %s2548_s20, %s2561_s30, %s2551_s22, %s2275_s24, %s2275_s24, %s2276_s18  }
  0xc3 PF: > { %p2757_p2 = scmp.ne.s32.totalorder %s2752_s21, 0 }
  0xc4   : > { %s389_s25 = sand.u32 (!%p2757_p2), 1, %s2223_s10   ;;  %p2758_p8 = scmp.ne.s32.totalorder (!%p2757_p2), %s2749_s19, 0 }
  0xc5   : > { %387 = sbr.rel (%p2757_p2) target bundleno = 1054 (0x41e), region = 56  ;;  %s2591_s29 = sshll.u32 (!%p2757_p2), %s389_s25, 6 }
  0xc6   : > { %s390_s15 = scalar_lea.sflag (!%p2757_p2), [#allocation3], %s389_s25  ;;  %s2594_s14 = scalar_lea.vmem (!%p2757_p2), [#allocation2], %s2591_s29 }
  0xcc   : > { %2198 = dma.done.wait (%p2758_p8), %s390_s15, 1024  }
  0xcd   : > { %2200 = vsyncadd (%p2758_p8), %s390_s15, 4294966272  ;;  %s398_s20 = sand.u32 1, %s2346_s13   ;;  %s2602_s22 = scalar_lea.vmem [#allocation4], %s2591_s29 }
  0xce   : > { %s399_s21 = scalar_lea.sflag [#allocation5], %s398_s20 }
  0xcf   : > { %2202 = dma.done.wait (%p2758_p8), %s399_s21, 1024  }
  0xd0   : > { %2204 = vsyncadd (%p2758_p8), %s399_s21, 4294966272  ;;  %p2759_p13 = scmp.eq.s32.totalorder %s2346_s13, 0 }
  0xd2   : > { %2206 = dma.done.wait (%p2759_p13), [#allocation5], 1024   ;;  %p2760_p4 = pmov %p2759_p13 }
  0xd4   : > { %2208 = vsyncadd (%p2760_p4), [#allocation5], 4294966272  ;;  %p2761_p1 = pmov %p2760_p4 }
  0xd6   : > { %2210 = dma.done.wait (%p2761_p1), [#allocation8], 2048   ;;  %p2762_p11 = pmov %p2761_p1 }
  0xd7   : > { %p2763_p10 = pmov %p2761_p1 }
  0xd8   : > { %2212 = vsyncadd (%p2762_p11), [#allocation8], 4294965248 }
  0xd9   : > { %2214 = dma.done.wait (%p2763_p10), [#allocation11], 1024   ;;  %p2764_p3 = pmov %p2761_p1 }
  0xda   : > { %v1885_v0 = vld [vmem:[#allocation7] sm:$0xff]   ;;  %v1886_v1 = vld [vmem:[#allocation7 + $0x8] sm:$0xff]   ;;  %v1887_v2 = vld [vmem:[#allocation7 + $0x10] sm:$0xff]   ;;  %s2765_s26 = sld [smem:[#allocation21_spill]]  ;;  %vm1162_vm0 = vcmask 15360   ;;  %s2646_s8 = scalar_lea.vmem [#allocation12], %s2591_s29  }
  0xdb   : > { %2216 = vsyncadd (%p2764_p3), [#allocation11], 4294966272  ;;  %1636 = vmatprep.subr.bf16.mxu0 %v1885_v0  ;;  %v1888_v3 = vld [vmem:[#allocation7 + $0x18] sm:$0xff]   ;;  %v485_v4 = vld [vmem:[%s2602_s22] sm:$0xff]  ;;  %s2766_s17 = sld [smem:[#allocation20_spill]] }
  0xdc   : > { %1637 = vmatpush3.bf16.msra.mxu0 %v1885_v0  ;;  %v486_v5 = vld [vmem:[%s2602_s22 + $0x8] sm:$0xff]  ;;  %v1889_v7 = vld [vmem:[#allocation7 + $0x20] sm:$0xff]   ;;  %v1891_v9 = vld [vmem:[#allocation7 + $0x30] sm:$0xff]  }
  0xdd   : > { %1638 = vmatprep.subr.bf16.mxu0 %v1886_v1  ;;  %v493_v6 = vpack.c.bf16 %v486_v5, %v485_v4  ;;  %v1890_v8 = vld [vmem:[#allocation7 + $0x28] sm:$0xff]   ;;  %v1892_v10 = vld [vmem:[#allocation7 + $0x38] sm:$0xff]   ;;  %v487_v11 = vld [vmem:[%s2602_s22 + $0x10] sm:$0xff] }
  0xde   : > { %v488_v12 = vld [vmem:[%s2602_s22 + $0x18] sm:$0xff]  ;;  %v1893_v13 = vld [vmem:[#allocation6] sm:$0xff]   ;;  %v490_v15 = vld [vmem:[%s2602_s22 + $0x28] sm:$0xff] }
  0xdf   : > { %1652 = vmatprep.mubr.bf16.mxu0 %v493_v6  ;;  %v489_v14 = vld [vmem:[%s2602_s22 + $0x20] sm:$0xff]  ;;  %v494_v16 = vpack.c.bf16 %v488_v12, %v487_v11  ;;  %v1894_v18 = vld [vmem:[#allocation6 + $0x8] sm:$0xff]   ;;  %v491_v19 = vld [vmem:[%s2602_s22 + $0x30] sm:$0xff] }
  0xe0   : > { %1639 = vmatpush3.bf16.msra.mxu0 %v1886_v1  ;;  %v495_v17 = vpack.c.bf16 %v490_v15, %v489_v14  ;;  %v492_v20 = vld [vmem:[%s2602_s22 + $0x38] sm:$0xff]  ;;  %v1895_v21 = vld [vmem:[#allocation6 + $0x10] sm:$0xff]   ;;  %v473_v22 = vld [vmem:[%s2594_s14] sm:$0xff] }
  0xe1   : > { %1640 = vmatprep.subr.bf16.mxu0 %v1887_v2  ;;  %v474_v23 = vld [vmem:[%s2594_s14 + $0x8] sm:$0xff]  ;;  %v496_v24 = vpack.c.bf16 %v492_v20, %v491_v19  ;;  %v1896_v26 = vld [vmem:[#allocation6 + $0x18] sm:$0xff]   ;;  %v1897_v27 = vld [vmem:[#allocation6 + $0x20] sm:$0xff]   ;;  %p2767_p7 = scmp.ne.s32.totalorder %s2766_s17, 0 }
  0xe2   : > { %v481_v25 = vpack.c.bf16 %v474_v23, %v473_v22  ;;  %v1898_v28 = vld [vmem:[#allocation6 + $0x28] sm:$0xff]   ;;  %v1899_v29 = vld [vmem:[#allocation6 + $0x30] sm:$0xff]   ;;  %v1900_v30 = vld [vmem:[#allocation6 + $0x38] sm:$0xff]   ;;  %s1567_s9 = sshll.u32 (%p2767_p7), %s2346_s13, 3  ;;  %s1585_s16 = sshll.u32 (%p2767_p7), %s2346_s13, 6 }
  0xe3   : > { %v475_v31 = vld [vmem:[%s2594_s14 + $0x10] sm:$0xff]  ;;  %v476_v32 = vld [vmem:[%s2594_s14 + $0x18] sm:$0xff]  ;;  %v477_v33 = vld [vmem:[%s2594_s14 + $0x20] sm:$0xff]  ;;  %s1179_s24 = ssub.s32 (%p2767_p7), 25, %s1567_s9  ;;  %s2768_s29 = sld [smem:[#allocation22_spill]] (%p2767_p7) }
  0xe4   : > { %1641 = vmatpush3.bf16.msra.mxu0 %v1887_v2  ;;  %v478_v34 = vld [vmem:[%s2594_s14 + $0x28] sm:$0xff]  ;;  %v482_v35 = vpack.c.bf16 %v476_v32, %v475_v31  ;;  %v479_v37 = vld [vmem:[%s2594_s14 + $0x30] sm:$0xff]  ;;  %v480_v38 = vld [vmem:[%s2594_s14 + $0x38] sm:$0xff]  ;;  %p1180_p6 = scmp.lt.s32.totalorder (%p2767_p7), %s1179_s24, 8 }
  0xe5   : > { %1642 = vmatprep.subr.bf16.mxu0 %v1888_v3  ;;  %v483_v36 = vpack.c.bf16 %v478_v34, %v477_v33  ;;  %v484_v39 = vpack.c.bf16 %v480_v38, %v479_v37  ;;  %v1901_v40 = vld [vmem:[#allocation9] sm:$0xff]   ;;  %v1902_v41 = vld [vmem:[#allocation9 + $0x8] sm:$0xff]   ;;  %v1903_v42 = vld [vmem:[#allocation9 + $0x10] sm:$0xff]  }
  0xe6   : > { %1684 = vmatprep.subr.bf16.mxu1 %v1901_v40  ;;  %v1904_v43 = vld [vmem:[#allocation9 + $0x18] sm:$0xff]   ;;  %v1905_v44 = vld [vmem:[#allocation9 + $0x20] sm:$0xff]   ;;  %v1906_v45 = vld [vmem:[#allocation9 + $0x28] sm:$0xff]  }
  0xe7   : > { %1685 = vmatpush3.bf16.msra.mxu1 %v1901_v40  ;;  %v1907_v46 = vld [vmem:[#allocation9 + $0x30] sm:$0xff]   ;;  %v1908_v47 = vld [vmem:[#allocation9 + $0x38] sm:$0xff]  }
  0xe8   : > { %1643 = vmatpush3.bf16.msra.mxu0 %v1888_v3  ;;  %1686 = vmatprep.subr.bf16.mxu1 %v1902_v41  ;;  %v1531_v48 = vld [vmem:[%s2732_s4] ss:$0 sm:$0xff] }
  0xe9   : > { %1644 = vmatprep.subr.bf16.mxu0 %v1889_v7  ;;  %s2671_s15 = scalar_lea.vmem (%p2767_p7), %s2768_s29, %s1585_s16  }
  0xeb   : > { %1687 = vmatpush3.bf16.msra.mxu1 %v1902_v41 }
  0xec   : > { %1645 = vmatpush3.bf16.msra.mxu0 %v1889_v7  ;;  %1688 = vmatprep.subr.bf16.mxu1 %v1903_v42 }
  0xed   : > { %1646 = vmatprep.subr.bf16.mxu0 %v1890_v8 }
  0xef   : > { %1689 = vmatpush3.bf16.msra.mxu1 %v1903_v42 }
  0xf0   : > { %1647 = vmatpush3.bf16.msra.mxu0 %v1890_v8  ;;  %1690 = vmatprep.subr.bf16.mxu1 %v1904_v43 }
  0xf1   : > { %1648 = vmatprep.subr.bf16.mxu0 %v1891_v9 }
  0xf3   : > { %1691 = vmatpush3.bf16.msra.mxu1 %v1904_v43 }
  0xf4   : > { %1649 = vmatpush3.bf16.msra.mxu0 %v1891_v9  ;;  %1692 = vmatprep.subr.bf16.mxu1 %v1905_v44 }
  0xf5   : > { %1650 = vmatprep.subr.bf16.mxu0 %v1892_v10 }
  0xf7   : > { %1693 = vmatpush3.bf16.msra.mxu1 %v1905_v44 }
  0xf8   : > { %1651 = vmatpush3.bf16.msra.mxu0 %v1892_v10  ;;  %1694 = vmatprep.subr.bf16.mxu1 %v1906_v45 }
  0xf9   : > { %1660 = vmatprep.subr.bf16.mxu0 %v1893_v13 }
  0xfb   : > { %1653 = vmatmul.mubr.bf16.vlgmr.msra.gmra.mrb[0].mxu0 %v494_v16  ;;  %1695 = vmatpush3.bf16.msra.mxu1 %v1906_v45  ;;  %v1909_v45 = vld [vmem:[#allocation10] sm:$0xff]  }
  0xfc   : > { %1661 = vmatpush3.bf16.msra.mxu0 %v1893_v13  ;;  %1656 = vmatprep.mubr.bf16.mxu0 %v495_v17 }
  0xfd   : > { %1662 = vmatprep.subr.bf16.mxu0 %v1894_v18  ;;  %1696 = vmatprep.subr.bf16.mxu1 %v1907_v46 }
  0xff   : > { %1697 = vmatpush3.bf16.msra.mxu1 %v1907_v46  ;;  %v1910_v46 = vld [vmem:[#allocation10 + $0x8] sm:$0xff]  }
 0x100   : > { %1663 = vmatpush3.bf16.msra.mxu0 %v1894_v18  ;;  %1698 = vmatprep.subr.bf16.mxu1 %v1908_v47 }
 0x101   : > { %1664 = vmatprep.subr.bf16.mxu0 %v1895_v21 }
 0x103   : > { %1657 = vmatmul.mubr.bf16.gmra.mrb[4].mxu0 %v496_v24  ;;  %1699 = vmatpush3.bf16.msra.mxu1 %v1908_v47  ;;  %v1911_v47 = vld [vmem:[#allocation10 + $0x10] sm:$0xff]  }
 0x104   : > { %1665 = vmatpush3.bf16.msra.mxu0 %v1895_v21  ;;  %1676 = vmatprep.mubr.bf16.mxu0 %v481_v25 }
 0x105   : > { %1666 = vmatprep.subr.bf16.mxu0 %v1896_v26  ;;  %1708 = vmatprep.subr.bf16.mxu1 %v1909_v45 }
 0x108   : > { %1667 = vmatpush3.bf16.msra.mxu0 %v1896_v26 }
 0x109   : > { %1668 = vmatprep.subr.bf16.mxu0 %v1897_v27 }
 0x10c   : > { %1669 = vmatpush3.bf16.msra.mxu0 %v1897_v27 }
 0x10d   : > { %1670 = vmatprep.subr.bf16.mxu0 %v1898_v28 }
 0x110   : > { %1671 = vmatpush3.bf16.msra.mxu0 %v1898_v28 }
 0x111   : > { %1672 = vmatprep.subr.bf16.mxu0 %v1899_v29 }
 0x114   : > { %1673 = vmatpush3.bf16.msra.mxu0 %v1899_v29 }
 0x115   : > { %1674 = vmatprep.subr.bf16.mxu0 %v1900_v30 }
 0x118   : > { %1675 = vmatpush3.bf16.msra.mxu0 %v1900_v30 }
 0x11b   : > { %1677 = vmatmul.mubr.bf16.vlgmr.msra.gmra.mrb[0].mxu0 %v482_v35 }
 0x11c   : > { %1680 = vmatprep.mubr.bf16.mxu0 %v483_v36 }
 0x123   : > { %1681 = vmatmul.mubr.bf16.gmra.mrb[4].mxu0 %v484_v39 }
 0x1ee   : > { %v1678_v49 = vpop.f32.mrb[0].mxu0 }
 0x1ef   : > { %v764_v50 = vadd.f32 %v1678_v49, %v1531_v48  ;;  %v724_v51 = vpop.f32.mrb[1].mxu0  ;;  %v1913_v49 = vld [vmem:[#allocation10 + $0x20] sm:$0xff]  }
 0x1f0   : > { %v762_v52 = vadd.f32 %v1531_v48, %v724_v51  ;;  %v1679_v53 = vpop.f32.mrb[2].mxu0  ;;  %v1915_v51 = vld [vmem:[#allocation10 + $0x30] sm:$0xff]  }
 0x1f1   : > { %v1534_v54 = vmul.f32 -1.442695, %v764_v50  ;;  %v765_v55 = vadd.f32 %v1679_v53, %v1531_v48  ;;  %v727_v56 = vpop.f32.mrb[3].mxu0  ;;  %v1540_v53 = vld [vmem:[%s2734_s6] ss:$0 sm:$0xff] }
 0x1f2   : > { %v1532_v57 = vmul.f32 -1.442695, %v762_v52  ;;  %v763_v58 = vadd.f32 %v1531_v48, %v727_v56 }
 0x1f3   : > { %1917 = vpow2.f32 %v1534_v54  ;;  %v1535_v59 = vmul.f32 -1.442695, %v765_v55 }
 0x1f4   : > { %1919 = vpow2.f32 %v1532_v57  ;;  %v1533_v60 = vmul.f32 -1.442695, %v763_v58 }
 0x1f5   : > { %1921 = vpow2.f32 %v1535_v59 }
 0x1f6   : > { %1923 = vpow2.f32 %v1533_v60  ;;  %v1682_v61 = vpop.f32.mrb[4].mxu0 }
 0x1f7   : > { %v768_v62 = vadd.f32 %v1682_v61, %v1531_v48  ;;  %v740_v63 = vpop.f32.mrb[5].mxu0 }
 0x1f8   : > { %v766_v0 = vadd.f32 %v1531_v48, %v740_v63  ;;  %v1683_v1 = vpop.f32.mrb[6].mxu0 }
 0x1f9   : > { %v1538_v2 = vmul.f32 -1.442695, %v768_v62  ;;  %v769_v3 = vadd.f32 %v1683_v1, %v1531_v48  ;;  %v743_v4 = vpop.f32.mrb[7].mxu0 }
 0x1fa   : > { %v1536_v5 = vmul.f32 -1.442695, %v766_v0  ;;  %v767_v6 = vadd.f32 %v1531_v48, %v743_v4  ;;  %v1912_v48 = vld [vmem:[#allocation10 + $0x18] sm:$0xff]  }
 0x1fb   : > { %1925 = vpow2.f32 %v1538_v2  ;;  %v1539_v7 = vmul.f32 -1.442695, %v769_v3 }
 0x1fc   : > { %1927 = vpow2.f32 %v1536_v5  ;;  %v1537_v8 = vmul.f32 -1.442695, %v767_v6 }
 0x1fd   : > { %v1918_v9 = vpop.eup %1917  ;;  %1929 = vpow2.f32 %v1539_v7 }
 0x1fe   : > { %v1920_v10 = vpop.eup %1919  ;;  %v796_v11 = vadd.f32 1.0, %v1918_v9  ;;  %1931 = vpow2.f32 %v1537_v8 }
 0x1ff   : > { %v1922_v12 = vpop.eup %1921  ;;  %v794_v13 = vadd.f32 1.0, %v1920_v10 }
 0x200   : > { %v1924_v14 = vpop.eup %1923  ;;  %1933 = vrcp.f32 %v796_v11  ;;  %v797_v15 = vadd.f32 1.0, %v1922_v12 }
 0x201   : > { %1935 = vrcp.f32 %v794_v13  ;;  %v795_v16 = vadd.f32 1.0, %v1924_v14 }
 0x202   : > { %1937 = vrcp.f32 %v797_v15 }
 0x203   : > { %1939 = vrcp.f32 %v795_v16 }
 0x205   : > { %v1926_v17 = vpop.eup %1925 }
 0x206   : > { %v1928_v18 = vpop.eup %1927  ;;  %v800_v19 = vadd.f32 1.0, %v1926_v17 }
 0x207   : > { %v1930_v20 = vpop.eup %1929  ;;  %v798_v21 = vadd.f32 1.0, %v1928_v18 }
 0x208   : > { %v1932_v22 = vpop.eup %1931  ;;  %1941 = vrcp.f32 %v800_v19  ;;  %v801_v23 = vadd.f32 1.0, %v1930_v20 }
 0x209   : > { %1943 = vrcp.f32 %v798_v21  ;;  %v799_v24 = vadd.f32 1.0, %v1932_v22 }
 0x20a   : > { %v1934_v25 = vpop.eup %1933  ;;  %1945 = vrcp.f32 %v801_v23 }
 0x20b   : > { %v1936_v26 = vpop.eup %1935  ;;  %1947 = vrcp.f32 %v799_v24  ;;  %v820_v29 = vmul.f32 %v1934_v25, %v764_v50  ;;  %v1914_v50 = vld [vmem:[#allocation10 + $0x28] sm:$0xff]  }
 0x20c   : > { %v1938_v27 = vpop.eup %1937  ;;  %v818_v31 = vmul.f32 %v1936_v26, %v762_v52  ;;  %v1916_v52 = vld [vmem:[#allocation10 + $0x38] sm:$0xff]  }
 0x20d   : > { %v1940_v28 = vpop.eup %1939  ;;  %v821_v30 = vmul.f32 %v1938_v27, %v765_v55 }
 0x20e   : > { %v819_v32 = vmul.f32 %v1940_v28, %v763_v58 }
 0x20f   : > { %v827_v33 = vpack.c.bf16 %v821_v30, %v820_v29 }
 0x210   : > { %v826_v34 = vpack.c.bf16 %v819_v32, %v818_v31 }
 0x212   : > { %v1942_v35 = vpop.eup %1941  ;;  %1700 = vmatprep.mubr.bf16.mxu1 %v826_v34 }
 0x213   : > { %v1944_v36 = vpop.eup %1943  ;;  %1701 = vmatmul.mubr.bf16.vlgmr.msra.gmra.mrb[0].mxu1 %v827_v33  ;;  %v824_v39 = vmul.f32 %v1942_v35, %v768_v62 }
 0x214   : > { %v1946_v37 = vpop.eup %1945  ;;  %v822_v41 = vmul.f32 %v1944_v36, %v766_v0  ;;  %1709 = vmatpush3.bf16.msra.mxu1 %v1909_v45 }
 0x215   : > { %v1948_v38 = vpop.eup %1947  ;;  %v825_v40 = vmul.f32 %v1946_v37, %v769_v3  ;;  %1710 = vmatprep.subr.bf16.mxu1 %v1910_v46 }
 0x216   : > { %v823_v42 = vmul.f32 %v1948_v38, %v767_v6 }
 0x217   : > { %v829_v43 = vpack.c.bf16 %v825_v40, %v824_v39 }
 0x218   : > { %v828_v44 = vpack.c.bf16 %v823_v42, %v822_v41  ;;  %1711 = vmatpush3.bf16.msra.mxu1 %v1910_v46 }
 0x219   : > { %1712 = vmatprep.subr.bf16.mxu1 %v1911_v47 }
 0x21a   : > { %1704 = vmatprep.mubr.bf16.mxu1 %v828_v44 }
 0x21b   : > { %1705 = vmatmul.mubr.bf16.gmra.mrb[4].mxu1 %v829_v43 }
 0x21c   : > { %1713 = vmatpush3.bf16.msra.mxu1 %v1911_v47 }
 0x21d   : > { %1714 = vmatprep.subr.bf16.mxu1 %v1912_v48 }
 0x220   : > { %1715 = vmatpush3.bf16.msra.mxu1 %v1912_v48 }
 0x221   : > { %1716 = vmatprep.subr.bf16.mxu1 %v1913_v49 }
 0x224   : > { %1717 = vmatpush3.bf16.msra.mxu1 %v1913_v49 }
 0x225   : > { %1718 = vmatprep.subr.bf16.mxu1 %v1914_v50 }
 0x228   : > { %1719 = vmatpush3.bf16.msra.mxu1 %v1914_v50  ;;  %v1557_v50 = vld [vmem:[%s2765_s26] ss:$0 sm:$0xff] }
 0x229   : > { %1720 = vmatprep.subr.bf16.mxu1 %v1915_v51 }
 0x22c   : > { %1721 = vmatpush3.bf16.msra.mxu1 %v1915_v51 }
 0x22d   : > { %1722 = vmatprep.subr.bf16.mxu1 %v1916_v52 }
 0x230   : > { %1723 = vmatpush3.bf16.msra.mxu1 %v1916_v52 }
 0x2e6   : > { %v1702_v54 = vpop.f32.mrb[0].mxu1 }
 0x2e7   : > { %v944_v55 = vadd.f32 %v1702_v54, %v1540_v53  ;;  %v935_v56 = vpop.f32.mrb[1].mxu1 }
 0x2e8   : > { %v936_v57 = vadd.f32 %v1540_v53, %v935_v56  ;;  %v1703_v58 = vpop.f32.mrb[2].mxu1 }
 0x2e9   : > { %v1551_v59 = vmul.f32 -1.442695, %v944_v55  ;;  %v947_v60 = vadd.f32 %v1703_v58, %v1540_v53  ;;  %v938_v61 = vpop.f32.mrb[3].mxu1 }
 0x2ea   : > { %v1549_v62 = vmul.f32 -1.442695, %v936_v57  ;;  %v939_v63 = vadd.f32 %v1540_v53, %v938_v61 }
 0x2eb   : > { %1949 = vpow2.f32 %v1551_v59  ;;  %v1552_v0 = vmul.f32 -1.442695, %v947_v60 }
 0x2ec   : > { %1951 = vpow2.f32 %v1549_v62  ;;  %v1550_v1 = vmul.f32 -1.442695, %v939_v63 }
 0x2ed   : > { %1953 = vpow2.f32 %v1552_v0 }
 0x2ee   : > { %1955 = vpow2.f32 %v1550_v1  ;;  %v1706_v2 = vpop.f32.mrb[4].mxu1 }
 0x2ef   : > { %v960_v3 = vadd.f32 %v1706_v2, %v1540_v53  ;;  %v951_v4 = vpop.f32.mrb[5].mxu1 }
 0x2f0   : > { %v952_v5 = vadd.f32 %v1540_v53, %v951_v4  ;;  %v1707_v6 = vpop.f32.mrb[6].mxu1 }
 0x2f1   : > { %v1555_v7 = vmul.f32 -1.442695, %v960_v3  ;;  %v963_v8 = vadd.f32 %v1707_v6, %v1540_v53  ;;  %v954_v9 = vpop.f32.mrb[7].mxu1 }
 0x2f2   : > { %v1553_v10 = vmul.f32 -1.442695, %v952_v5  ;;  %v955_v11 = vadd.f32 %v1540_v53, %v954_v9 }
 0x2f3   : > { %1957 = vpow2.f32 %v1555_v7  ;;  %v1556_v12 = vmul.f32 -1.442695, %v963_v8 }
 0x2f4   : > { %1959 = vpow2.f32 %v1553_v10  ;;  %v1554_v13 = vmul.f32 -1.442695, %v955_v11 }
 0x2f5   : > { %v1950_v14 = vpop.eup %1949  ;;  %1961 = vpow2.f32 %v1556_v12 }
 0x2f6   : > { %v1952_v15 = vpop.eup %1951  ;;  %v992_v16 = vadd.f32 1.0, %v1950_v14  ;;  %1963 = vpow2.f32 %v1554_v13 }
 0x2f7   : > { %v1954_v17 = vpop.eup %1953  ;;  %v990_v18 = vadd.f32 1.0, %v1952_v15 }
 0x2f8   : > { %v1956_v19 = vpop.eup %1955  ;;  %1965 = vrcp.f32 %v992_v16  ;;  %v993_v20 = vadd.f32 1.0, %v1954_v17 }
 0x2f9   : > { %1967 = vrcp.f32 %v990_v18  ;;  %v991_v21 = vadd.f32 1.0, %v1956_v19 }
 0x2fa   : > { %1969 = vrcp.f32 %v993_v20 }
 0x2fb   : > { %1971 = vrcp.f32 %v991_v21 }
 0x2fd   : > { %v1958_v22 = vpop.eup %1957 }
 0x2fe   : > { %v1960_v23 = vpop.eup %1959  ;;  %v996_v24 = vadd.f32 1.0, %v1958_v22 }
 0x2ff   : > { %v1962_v25 = vpop.eup %1961  ;;  %v994_v26 = vadd.f32 1.0, %v1960_v23 }
 0x300   : > { %v1964_v27 = vpop.eup %1963  ;;  %1973 = vrcp.f32 %v996_v24  ;;  %v997_v28 = vadd.f32 1.0, %v1962_v25 }
 0x301   : > { %1975 = vrcp.f32 %v994_v26  ;;  %v995_v29 = vadd.f32 1.0, %v1964_v27 }
 0x302   : > { %v1966_v30 = vpop.eup %1965  ;;  %1977 = vrcp.f32 %v997_v28 }
 0x303   : > { %v1968_v31 = vpop.eup %1967  ;;  %1979 = vrcp.f32 %v995_v29  ;;  %v1016_v34 = vmul.f32 %v1966_v30, %v944_v55 }
 0x304   : > { %v1970_v32 = vpop.eup %1969  ;;  %v1014_v36 = vmul.f32 %v1968_v31, %v936_v57 }
 0x305   : > { %v1972_v33 = vpop.eup %1971  ;;  %v1017_v35 = vmul.f32 %v1970_v32, %v947_v60 }
 0x306   : > { %v1015_v37 = vmul.f32 %v1972_v33, %v939_v63 }
 0x307   : > { %v1023_v38 = vpack.c.bf16 %v1017_v35, %v1016_v34 }
 0x308   : > { %v1022_v39 = vpack.c.bf16 %v1015_v37, %v1014_v36 }
 0x30a   : > { %v1974_v40 = vpop.eup %1973  ;;  %1724 = vmatprep.mubr.bf16.mxu1 %v1022_v39 }
 0x30b   : > { %v1976_v41 = vpop.eup %1975  ;;  %1725 = vmatmul.mubr.bf16.vlgmr.msra.gmra.mrb[8].mxu1 %v1023_v38  ;;  %v1020_v44 = vmul.f32 %v1974_v40, %v960_v3 }
 0x30c   : > { %v1978_v42 = vpop.eup %1977  ;;  %v1018_v46 = vmul.f32 %v1976_v41, %v952_v5 }
 0x30d   : > { %v1980_v43 = vpop.eup %1979  ;;  %v1021_v45 = vmul.f32 %v1978_v42, %v963_v8 }
 0x30e   : > { %v1019_v47 = vmul.f32 %v1980_v43, %v955_v11 }
 0x30f   : > { %v1025_v48 = vpack.c.bf16 %v1021_v45, %v1020_v44 }
 0x310   : > { %v1024_v49 = vpack.c.bf16 %v1019_v47, %v1018_v46 }
 0x312   : > { %1728 = vmatprep.mubr.bf16.mxu1 %v1024_v49 }
 0x313   : > { %1729 = vmatmul.mubr.bf16.gmra.mrb[12].mxu1 %v1025_v48 }
 0x3de   : > { %v1726_v51 = vpop.f32.mrb[8].mxu1 }
 0x3df   : > { %v1140_v52 = vadd.f32 %v1726_v51, %v1557_v50  ;;  %v1131_v53 = vpop.f32.mrb[9].mxu1 }
 0x3e0   : > { %v1132_v54 = vadd.f32 %v1557_v50, %v1131_v53  ;;  %v1727_v55 = vpop.f32.mrb[10].mxu1 }
 0x3e1   : > { %1165 = vst.msk [vmem:[%s2646_s8 + $0x10] sm:$0xff] %vm1162_vm0, %v1140_v52  ;;  %v1143_v56 = vadd.f32 %v1727_v55, %v1557_v50  ;;  %v1134_v57 = vpop.f32.mrb[11].mxu1 }
 0x3e2   : > { %1163 = vst.msk [vmem:[%s2646_s8] sm:$0xff] %vm1162_vm0, %v1132_v54  ;;  %v1135_v58 = vadd.f32 %v1557_v50, %v1134_v57 }
 0x3e3   : > { %1166 = vst.msk [vmem:[%s2646_s8 + $0x18] sm:$0xff] %vm1162_vm0, %v1143_v56 }
 0x3e4   : > { %1164 = vst.msk [vmem:[%s2646_s8 + $0x8] sm:$0xff] %vm1162_vm0, %v1135_v58 }
 0x3e6   : > { %v1730_v59 = vpop.f32.mrb[12].mxu1  ;;  %1177 = sbr.rel (!%p2767_p7) target bundleno = 1054 (0x41e), region = 84 }
 0x3e7   : > { %v1156_v60 = vadd.f32 %v1730_v59, %v1557_v50  ;;  %v1147_v61 = vpop.f32.mrb[13].mxu1 }
 0x3e8   : > { %v1148_v62 = vadd.f32 %v1557_v50, %v1147_v61  ;;  %v1731_v63 = vpop.f32.mrb[14].mxu1 }
 0x3e9   : > { %1169 = vst.msk [vmem:[%s2646_s8 + $0x30] sm:$0xff] %vm1162_vm0, %v1156_v60  ;;  %v1159_v0 = vadd.f32 %v1731_v63, %v1557_v50  ;;  %v1150_v1 = vpop.f32.mrb[15].mxu1 }
 0x3ea   : > { %1167 = vst.msk [vmem:[%s2646_s8 + $0x20] sm:$0xff] %vm1162_vm0, %v1148_v62  ;;  %v1151_v2 = vadd.f32 %v1557_v50, %v1150_v1 }
 0x3eb   : > { %1170 = vst.msk [vmem:[%s2646_s8 + $0x38] sm:$0xff] %vm1162_vm0, %v1159_v0 }
 0x3ec   : > { %1168 = vst.msk [vmem:[%s2646_s8 + $0x28] sm:$0xff] %vm1162_vm0, %v1151_v2 }
 0x3ed   : > { %s2782_s24 = smov (!%p1180_p6, %s1179_s24), 8 }
 0x3ee   : > { %s1568_s14 = sshll.u32 %s2782_s24, 7 }
 0x3ef   : > { %p1571_p9 = scmp.eq.s32.totalorder %s1568_s14, 0 }
 0x3f0   : > { %s2677_s20 = sshrl.u32 (!%p1571_p9), %s2782_s24, 3 }
 0x3f1   : > { %1188 = sbr.rel (%p1571_p9) target bundleno = 1054 (0x41e), region = 88  ;;  %p1572_p12 = scmp.le.s32.totalorder (!%p1571_p9), %s2677_s20, 0 }
 0x3f8   : > { %1394 = sbr.rel (%p1572_p12) target bundleno = 1033 (0x409), region = 179  ;;  %s2769_s13 = smov (!%p1572_p12), %s2671_s15 }
 0x3f9   : > { %s2770_s21 = smov (!%p1572_p12), %s2646_s8  ;;  %s2686_s22 = smov (!%p1572_p12), 0  }
 0x3fa   : > { %s2688_s19 = smov (!%p1572_p12), 0  }
 0x3ff LB: >> { %v1264_v3 = vld [vmem:[%s2239_s21] sm:$0xff]  ;;  %v1266_v4 = vld [vmem:[%s2239_s21 + $0x8] sm:$0xff]  ;;  %v1268_v5 = vld [vmem:[%s2239_s21 + $0x10] sm:$0xff]  ;;  %s1280_s23 = sadd.s32 1, %s2243_s22  ;;  %s1258_s19 = sadd.s32 1, %s2247_s19   ;;  %s2247_s19 = sphi %s2688_s19, %s1258_s19   ;;  %s2243_s22 = sphi %s2686_s22, %s2771_s22   ;;  %s2239_s21 = sphi %s2770_s21, %s1285_s21   ;;  %s2235_s13 = sphi %s2769_s13, %s1286_s13  }
 0x400   : >> { %1265 = vst [vmem:[%s2235_s13] sm:$0xff] %v1264_v3  ;;  %1267 = vst [vmem:[%s2235_s13 + $0x8] sm:$0xff] %v1266_v4  ;;  %v1270_v6 = vld [vmem:[%s2239_s21 + $0x18] sm:$0xff]  ;;  %v1272_v7 = vld [vmem:[%s2239_s21 + $0x20] sm:$0xff]  ;;  %p1281_p0 = scmp.ge.s32.totalorder %s1280_s23, %s2677_s20  ;;  %p1257_p5 = scmp.ge.s32.totalorder %s1258_s19, %s2677_s20 }
 0x401   : >> { %1269 = vst [vmem:[%s2235_s13 + $0x10] sm:$0xff] %v1268_v5  ;;  %v1274_v8 = vld [vmem:[%s2239_s21 + $0x28] sm:$0xff]  ;;  %1271 = vst [vmem:[%s2235_s13 + $0x18] sm:$0xff] %v1270_v6  ;;  %v1276_v9 = vld [vmem:[%s2239_s21 + $0x30] sm:$0xff] }
 0x402   : >> { %1273 = vst [vmem:[%s2235_s13 + $0x20] sm:$0xff] %v1272_v7  ;;  %1275 = vst [vmem:[%s2235_s13 + $0x28] sm:$0xff] %v1274_v8  ;;  %v1278_v10 = vld [vmem:[%s2239_s21 + $0x38] sm:$0xff]  ;;  %s2784_s23 = smov (%p1281_p0, %s1280_s23), 0  ;;  %1260 = sbr.rel (!%p1257_p5) target bundleno = 1023 (0x3ff), region = 185 }
 0x403   : >> { %1277 = vst [vmem:[%s2235_s13 + $0x30] sm:$0xff] %v1276_v9  ;;  %1279 = vst [vmem:[%s2235_s13 + $0x38] sm:$0xff] %v1278_v10  ;;  %s1573_s30 = sshll.u32 %s2784_s23, 6  ;;  %s2771_s22 = smov %s2784_s23 }
 0x404   : >> { %s1285_s21 = scalar_lea.vmem %s2646_s8, %s1573_s30 [#allocation12]   ;;  %s1286_s13 = scalar_lea.vmem %s2671_s15, %s1573_s30  }
 0x409 PF: > { %s2707_s27 = sand.u32 7, %s2782_s24   ;;  %s1586_s12 = sshll.u32 %s2677_s20, 6 }
 0x40a   : > { %s1291_s28 = scalar_lea.vmem %s2646_s8, %s1586_s12 [#allocation12]   ;;  %s1293_s26 = scalar_lea.vmem %s2671_s15, %s1586_s12  }
 0x40b   : > { %p1578_p2 = scmp.le.s32.totalorder %s2707_s27, 0 }
 0x40c   : > { %s2249_s17 = smov (!%p1578_p2), %s1293_s26   ;;  %s2253_s9 = smov (!%p1578_p2), %s1291_s28  }
 0x40d   : > { %1408 = sbr.rel (%p1578_p2) target bundleno = 1054 (0x41e), region = 190  ;;  %s2257_s16 = smov (!%p1578_p2), 0  }
 0x40e   : > { %s2261_s18 = smov (!%p1578_p2), 0  }
 0x414 LB: >> { %v1303_v11 = vld [vmem:[%s2255_s9] sm:$0xff]  ;;  %s1305_s24 = sadd.s32 1, %s2259_s16  ;;  %s1297_s18 = sadd.s32 1, %s2263_s18   ;;  %s2263_s18 = sphi %s2261_s18, %s1297_s18   ;;  %s2259_s16 = sphi %s2257_s16, %s2258_s16   ;;  %s2255_s9 = sphi %s2253_s9, %s1310_s9   ;;  %s2251_s17 = sphi %s2249_s17, %s1311_s17  }
 0x415   : >> { %1304 = vst [vmem:[%s2251_s17] sm:$0xff] %v1303_v11  ;;  %p1306_p8 = scmp.ge.s32.totalorder %s1305_s24, %s2707_s27  ;;  %p1296_p13 = scmp.ge.s32.totalorder %s1297_s18, %s2707_s27 }
 0x417   : >> { %s2786_s24 = smov (%p1306_p8, %s1305_s24), 0  ;;  %1299 = sbr.rel (!%p1296_p13) target bundleno = 1044 (0x414), region = 196 }
 0x418   : >> { %s1579_s8 = sshll.u32 %s2786_s24, 3  ;;  %s2258_s16 = smov %s2786_s24  }
 0x419   : >> { %s1310_s9 = scalar_lea.vmem %s1291_s28, %s1579_s8 [#allocation12]   ;;  %s1311_s17 = scalar_lea.vmem %s1293_s26, %s1579_s8  }
 0x41e PF: > { %s2772_s12 = sld [smem:[#allocation18_spill]]  ;;  %s2773_s25 = sld [smem:[#allocation19_spill]] }
 0x41f   : > { %s2774_s30 = smov %s2223_s10  ;;  %s2775_s10 = smov %s2227_s11 }
 0x424   : > { %p24_p4 = scmp.ge.s32.totalorder %s2772_s12, 6   ;;  %s2776_s11 = smov %s2773_s25 }
 0x426   :  { %26 = sbr.rel (!%p24_p4) target bundleno = 10 (0xa), region = 207 }
 0x42d   :  { %1327 = vsyncpa [#allocation3], 1 }
 0x42e   :  { %1329 = vsyncpa [#allocation3 + $0x1], 1 }
 0x42f   :  { %1330 = vsyncpa [#allocation5], 1 }
 0x430   :  { %1332 = vsyncpa [#allocation5 + $0x1], 1 }
 0x431   :  { %1333 = vsyncpa [#allocation8], 1 }
 0x432   :  { %1334 = vsyncpa [#allocation11], 1 }

</bundles_post_ra>
